<compile_context>
chip_gen: v7x
topology: tpu7x:2x2x1
jax: 0.10.0
libtpu: 0.0.40
codegen_flags: <defaults>
</compile_context>

<pallas_src>
import jax
import jax.numpy as jnp
from jax.experimental import pallas as pl
from jax.experimental.pallas import tpu as pltpu


def _linear_add_relu_kernel(wt_ref, bo_ref, xt_ref, ot_ref):
    # wt_ref: SMEM (OUT*IN,) f32 -- PyTorch Linear weight, row-major (o, k).
    # bo_ref: SMEM (OUT,)    f32 -- bias + other, folded on the host.
    # xt_ref: VMEM (IN,  R, 128) f32 -- activations, batch = sublane-rows x lanes.
    # ot_ref: VMEM (OUT, R, 128) f32 -- output, lane/sublane dense.
    n_in = xt_ref.shape[0]
    n_out = ot_ref.shape[0]
    for o in range(n_out):                 # static unroll, OUT = 3
        y = xt_ref[0] * wt_ref[o * n_in + 0] + bo_ref[o]
        for k in range(1, n_in):           # static unroll, IN = 2
            y = y + xt_ref[k] * wt_ref[o * n_in + k]
        ot_ref[o] = jnp.maximum(y, 0.0)    # relu, lane-dense store


def _round_up(n, m):
    return -(-n // m) * m


# Row budgets for the 3-D layout: (IN + OUT) * 4 B/row * 2 (double buffer)
# = 40 B/row -> 256K rows ~= 10.5 MiB of VMEM (safe on v5e/v6e/v7x defaults).
_MAX_BLOCK_ROWS = 262144
# Keep tiles >= ~64K rows so the ~0.35 us per-grid-step overhead stays small.
_MIN_BLOCK_ROWS = 65536


def linear_add_relu(x, w_t, b, other, *, force_pallas=False, block_rows=None):
    """y = relu(x @ w_t.T + b + other).

    x: (B, IN) f32, w_t: (OUT, IN) f32 (PyTorch Linear layout),
    b: (OUT,) f32, other: (1, OUT) f32 (broadcasts over batch).
    """
    B, IN = x.shape
    OUT = w_t.shape[0]
    # NOTE: folding `other` into the bias is only valid for (1, OUT) `other`.
    bo = (b.reshape(OUT) + other.reshape(OUT)).astype(jnp.float32)

    # Tiny batches: a pallas_call's fixed overhead dwarfs ~50 FLOPs of work,
    # and the op is HBM-bound -- a single fused XLA pass is at roofline.
    if not force_pallas and B < 4096:
        return jnp.maximum(
            x.astype(jnp.float32) @ w_t.T.astype(jnp.float32) + bo.reshape(1, OUT),
            0.0)

    # Pad the batch only to a multiple of 1024 (= 8 sublanes x 128 lanes).
    Bp = _round_up(B, 1024)
    NR = Bp // 128                       # total 128-lane rows (multiple of 8)

    if block_rows is None:
        # Aim for >= 4 grid steps (v7x has 2 TCs -> 'parallel' axis must have
        # multiple steps to shard), bounded by the min/max row budgets.
        Bt = _round_up(max(_MIN_BLOCK_ROWS, -(-B // 4)), 1024)
        Bt = min(Bt, _MAX_BLOCK_ROWS, Bp)
    else:
        Bt = min(_round_up(block_rows, 1024), Bp)
    R = Bt // 128                        # sublane-rows per tile (multiple of 8)
    grid = pl.cdiv(NR, R)                # ragged final tile allowed

    # (IN, Bp) -> (IN, NR, 128) is a free row-major view; padding is minimal.
    xt = jnp.pad(x.astype(jnp.float32).T, ((0, 0), (0, Bp - B)))
    xt3 = xt.reshape(IN, NR, 128)

    out3 = pl.pallas_call(
        _linear_add_relu_kernel,
        out_shape=jax.ShapeDtypeStruct((OUT, NR, 128), jnp.float32),
        grid=(grid,),
        in_specs=[
            pl.BlockSpec(memory_space=pltpu.MemorySpace.SMEM),   # weights (flat)
            pl.BlockSpec(memory_space=pltpu.MemorySpace.SMEM),   # bias + other
            pl.BlockSpec((IN, R, 128), lambda i: (0, i, 0)),     # activations
        ],
        out_specs=pl.BlockSpec((OUT, R, 128), lambda i: (0, i, 0)),
        compiler_params=pltpu.CompilerParams(
            dimension_semantics=("parallel",),
        ),
    )(w_t.astype(jnp.float32).reshape(OUT * IN), bo, xt3)

    # Back to the PyTorch (B, OUT) layout; padded / out-of-bounds batch columns
    # (which compute relu(bias+other) or garbage) are dropped here.
    return out3.reshape(OUT, Bp)[:, :B].T


if __name__ == "__main__":
    key = jax.random.PRNGKey(0)
    k_x, k_w, k_b, k_o, k_x2 = jax.random.split(key, 5)

    B, IN, OUT = 4, 2, 3

    # Linear(2, 3) parameters in PyTorch layout: weight (OUT, IN), bias (OUT,)
    w_t = jax.random.normal(k_w, (OUT, IN), dtype=jnp.float32) * 0.5
    b = jax.random.normal(k_b, (OUT,), dtype=jnp.float32) * 0.1
    other = jax.random.normal(k_o, (1, OUT), dtype=jnp.float32)   # torch.randn(1, 3)

    def ref_fn(xx):
        return jnp.maximum(xx @ w_t.T + b.reshape(1, OUT) + other, 0.0)

    # Small input matching the module's forward: (4, 2).
    x = jax.random.normal(k_x, (B, IN), dtype=jnp.float32)
    out = jax.block_until_ready(linear_add_relu(x, w_t, b, other, force_pallas=True))
    assert out.shape == (B, OUT)
    assert jnp.allclose(out, ref_fn(x), atol=1e-5, rtol=1e-5), "mismatch (B=4)"

    # Multi-tile parallel batch grid: B=5000 -> Bp=5120, NR=40, R=8, grid=5.
    B2 = 5000
    x2 = jax.random.normal(k_x2, (B2, IN), dtype=jnp.float32)
    out2 = jax.block_until_ready(
        linear_add_relu(x2, w_t, b, other, force_pallas=True, block_rows=1024))
    assert jnp.allclose(out2, ref_fn(x2), atol=1e-5, rtol=1e-5), "mismatch (B=5000, 5 tiles)"

    # Ragged final tile: R=24, grid=cdiv(40,24)=2 (last tile hangs off the end).
    out3 = jax.block_until_ready(
        linear_add_relu(x2, w_t, b, other, force_pallas=True, block_rows=3072))
    assert jnp.allclose(out3, ref_fn(x2), atol=1e-5, rtol=1e-5), "mismatch (B=5000, ragged)"

    print("KERNEL_OK")
</pallas_src>

<mosaic_0001>
module attributes {stable_mosaic.version = 11 : i64} {
  func.func @_linear_add_relu_kernel(%arg0: i32, %arg1: memref<6xf32, #tpu.memory_space<smem>>, %arg2: memref<3xf32, #tpu.memory_space<smem>>, %arg3: memref<2x8x128xf32, #tpu.memory_space<vmem>>, %arg4: memref<3x8x128xf32, #tpu.memory_space<vmem>>) attributes {dimension_semantics = [#tpu.dimension_semantics<parallel>], iteration_bounds = array<i64: 1>, scalar_prefetch = 0 : i64, scratch_operands = 0 : i64, tpu.core_type = #tpu.core_type<tc>, window_params = [{transform_indices = @transform_0, window_bounds = array<i64: 6>}, {transform_indices = @transform_1, window_bounds = array<i64: 3>}, {transform_indices = @transform_2, window_bounds = array<i64: 2, 8, 128>}, {transform_indices = @transform_3, window_bounds = array<i64: 3, 8, 128>}]} {
    %c0 = arith.constant 0 : index
    %c0_0 = arith.constant 0 : index
    %c0_1 = arith.constant 0 : index
    %0 = vector.load %arg3[%c0, %c0_0, %c0_1] : memref<2x8x128xf32, #tpu.memory_space<vmem>>, vector<1x8x128xf32>
    %1 = vector.shape_cast %0 : vector<1x8x128xf32> to vector<8x128xf32>
    %c0_2 = arith.constant 0 : index
    %2 = memref.load %arg1[%c0_2] : memref<6xf32, #tpu.memory_space<smem>>
    %3 = vector.broadcast %2 : f32 to vector<8x128xf32>
    %4 = arith.mulf %1, %3 : vector<8x128xf32>
    %c0_3 = arith.constant 0 : index
    %5 = memref.load %arg2[%c0_3] : memref<3xf32, #tpu.memory_space<smem>>
    %6 = vector.broadcast %5 : f32 to vector<8x128xf32>
    %7 = arith.addf %4, %6 : vector<8x128xf32>
    %c1 = arith.constant 1 : index
    %c0_4 = arith.constant 0 : index
    %c0_5 = arith.constant 0 : index
    %8 = vector.load %arg3[%c1, %c0_4, %c0_5] : memref<2x8x128xf32, #tpu.memory_space<vmem>>, vector<1x8x128xf32>
    %9 = vector.shape_cast %8 : vector<1x8x128xf32> to vector<8x128xf32>
    %c1_6 = arith.constant 1 : index
    %10 = memref.load %arg1[%c1_6] : memref<6xf32, #tpu.memory_space<smem>>
    %11 = vector.broadcast %10 : f32 to vector<8x128xf32>
    %12 = arith.mulf %9, %11 : vector<8x128xf32>
    %13 = arith.addf %7, %12 : vector<8x128xf32>
    %cst = arith.constant 0.000000e+00 : f32
    %14 = vector.broadcast %cst : f32 to vector<8x128xf32>
    %15 = arith.maximumf %13, %14 : vector<8x128xf32>
    %c0_7 = arith.constant 0 : index
    %c0_8 = arith.constant 0 : index
    %c0_9 = arith.constant 0 : index
    %16 = vector.load %arg4[%c0_7, %c0_8, %c0_9] : memref<3x8x128xf32, #tpu.memory_space<vmem>>, vector<1x8x128xf32>
    %17 = vector.shape_cast %16 : vector<1x8x128xf32> to vector<8x128xf32>
    %18 = vector.shape_cast %15 : vector<8x128xf32> to vector<1x8x128xf32>
    tpu.vector_store %arg4[%c0_7, %c0_8, %c0_9], %18 {strides = array<i32>} : memref<3x8x128xf32, #tpu.memory_space<vmem>>, vector<1x8x128xf32>,
    %c0_10 = arith.constant 0 : index
    %c0_11 = arith.constant 0 : index
    %c0_12 = arith.constant 0 : index
    %19 = vector.load %arg3[%c0_10, %c0_11, %c0_12] : memref<2x8x128xf32, #tpu.memory_space<vmem>>, vector<1x8x128xf32>
    %20 = vector.shape_cast %19 : vector<1x8x128xf32> to vector<8x128xf32>
    %c2 = arith.constant 2 : index
    %21 = memref.load %arg1[%c2] : memref<6xf32, #tpu.memory_space<smem>>
    %22 = vector.broadcast %21 : f32 to vector<8x128xf32>
    %23 = arith.mulf %20, %22 : vector<8x128xf32>
    %c1_13 = arith.constant 1 : index
    %24 = memref.load %arg2[%c1_13] : memref<3xf32, #tpu.memory_space<smem>>
    %25 = vector.broadcast %24 : f32 to vector<8x128xf32>
    %26 = arith.addf %23, %25 : vector<8x128xf32>
    %c1_14 = arith.constant 1 : index
    %c0_15 = arith.constant 0 : index
    %c0_16 = arith.constant 0 : index
    %27 = vector.load %arg3[%c1_14, %c0_15, %c0_16] : memref<2x8x128xf32, #tpu.memory_space<vmem>>, vector<1x8x128xf32>
    %28 = vector.shape_cast %27 : vector<1x8x128xf32> to vector<8x128xf32>
    %c3 = arith.constant 3 : index
    %29 = memref.load %arg1[%c3] : memref<6xf32, #tpu.memory_space<smem>>
    %30 = vector.broadcast %29 : f32 to vector<8x128xf32>
    %31 = arith.mulf %28, %30 : vector<8x128xf32>
    %32 = arith.addf %26, %31 : vector<8x128xf32>
    %cst_17 = arith.constant 0.000000e+00 : f32
    %33 = vector.broadcast %cst_17 : f32 to vector<8x128xf32>
    %34 = arith.maximumf %32, %33 : vector<8x128xf32>
    %c1_18 = arith.constant 1 : index
    %c0_19 = arith.constant 0 : index
    %c0_20 = arith.constant 0 : index
    %35 = vector.load %arg4[%c1_18, %c0_19, %c0_20] : memref<3x8x128xf32, #tpu.memory_space<vmem>>, vector<1x8x128xf32>
    %36 = vector.shape_cast %35 : vector<1x8x128xf32> to vector<8x128xf32>
    %37 = vector.shape_cast %34 : vector<8x128xf32> to vector<1x8x128xf32>
    tpu.vector_store %arg4[%c1_18, %c0_19, %c0_20], %37 {strides = array<i32>} : memref<3x8x128xf32, #tpu.memory_space<vmem>>, vector<1x8x128xf32>,
    %c0_21 = arith.constant 0 : index
    %c0_22 = arith.constant 0 : index
    %c0_23 = arith.constant 0 : index
    %38 = vector.load %arg3[%c0_21, %c0_22, %c0_23] : memref<2x8x128xf32, #tpu.memory_space<vmem>>, vector<1x8x128xf32>
    %39 = vector.shape_cast %38 : vector<1x8x128xf32> to vector<8x128xf32>
    %c4 = arith.constant 4 : index
    %40 = memref.load %arg1[%c4] : memref<6xf32, #tpu.memory_space<smem>>
    %41 = vector.broadcast %40 : f32 to vector<8x128xf32>
    %42 = arith.mulf %39, %41 : vector<8x128xf32>
    %c2_24 = arith.constant 2 : index
    %43 = memref.load %arg2[%c2_24] : memref<3xf32, #tpu.memory_space<smem>>
    %44 = vector.broadcast %43 : f32 to vector<8x128xf32>
    %45 = arith.addf %42, %44 : vector<8x128xf32>
    %c1_25 = arith.constant 1 : index
    %c0_26 = arith.constant 0 : index
    %c0_27 = arith.constant 0 : index
    %46 = vector.load %arg3[%c1_25, %c0_26, %c0_27] : memref<2x8x128xf32, #tpu.memory_space<vmem>>, vector<1x8x128xf32>
    %47 = vector.shape_cast %46 : vector<1x8x128xf32> to vector<8x128xf32>
    %c5 = arith.constant 5 : index
    %48 = memref.load %arg1[%c5] : memref<6xf32, #tpu.memory_space<smem>>
    %49 = vector.broadcast %48 : f32 to vector<8x128xf32>
    %50 = arith.mulf %47, %49 : vector<8x128xf32>
    %51 = arith.addf %45, %50 : vector<8x128xf32>
    %cst_28 = arith.constant 0.000000e+00 : f32
    %52 = vector.broadcast %cst_28 : f32 to vector<8x128xf32>
    %53 = arith.maximumf %51, %52 : vector<8x128xf32>
    %c2_29 = arith.constant 2 : index
    %c0_30 = arith.constant 0 : index
    %c0_31 = arith.constant 0 : index
    %54 = vector.load %arg4[%c2_29, %c0_30, %c0_31] : memref<3x8x128xf32, #tpu.memory_space<vmem>>, vector<1x8x128xf32>
    %55 = vector.shape_cast %54 : vector<1x8x128xf32> to vector<8x128xf32>
    %56 = vector.shape_cast %53 : vector<8x128xf32> to vector<1x8x128xf32>
    tpu.vector_store %arg4[%c2_29, %c0_30, %c0_31], %56 {strides = array<i32>} : memref<3x8x128xf32, #tpu.memory_space<vmem>>, vector<1x8x128xf32>,
    return
  }
  func.func @transform_0(%arg0: i32) -> i32 {
    %c0_i32 = arith.constant 0 : i32
    %c0_i32_0 = arith.constant 0 : i32
    return %c0_i32 : i32
  }
  func.func @transform_1(%arg0: i32) -> i32 {
    %c0_i32 = arith.constant 0 : i32
    %c0_i32_0 = arith.constant 0 : i32
    return %c0_i32 : i32
  }
  func.func @transform_2(%arg0: i32) -> (i32, i32, i32) {
    %c0_i32 = arith.constant 0 : i32
    %c0_i32_0 = arith.constant 0 : i32
    %c0_i32_1 = arith.constant 0 : i32
    return %c0_i32, %arg0, %c0_i32_0 : i32, i32, i32
  }
  func.func @transform_3(%arg0: i32) -> (i32, i32, i32) {
    %c0_i32 = arith.constant 0 : i32
    %c0_i32_0 = arith.constant 0 : i32
    %c0_i32_1 = arith.constant 0 : i32
    return %c0_i32, %arg0, %c0_i32_0 : i32, i32, i32
  }
}

</mosaic_0001>

<bundles_post_ra>
// kernel: tpu_custom_call.1
= control target key start
LH: loop header
LB: loop body
LE: loop exit
PB: predicated region body
PF: predicated region fallthrough
CT: control target
= control target key end

     0   :  { %8 = vsyncpa [#allocation5], 0  ;;  %s274_s0 = inlined_call_operand.hbm [shape: f32[6], index: 0, kind: input, shape index: {}]   ;;  %s275_s1 = inlined_call_operand.vmem [shape: f32[3], index: 1, kind: input, shape index: {}]   ;;  %s276_s2 = inlined_call_operand.hbm [shape: f32[2,8,128], index: 2, kind: input, shape index: {}]   ;;  %s277_s3 = inlined_call_operand.hbm [shape: f32[3,8,128], index: 3, kind: output, shape index: {}]  }
   0x1   :  { %9 = vsyncpa [#allocation6], 0 }
   0x2   :  { %10 = vsyncpa [#allocation3], 0 }
   0x3   :  { %11 = vsyncpa [#allocation4], 0  ;;  %s26_s14 = sshll.u32 %s275_s1, 4  ;;  %s129_s17 = scalar_lea.hbm %s274_s0, 16  ;;  %s27_s14 = int_to_ptr.vmem [resolvable:$true] %s26_s14 }
   0x4   :  { %p130_p0 = scmp.ne.s32.totalorder %s274_s0, %s129_s17  ;;  %p133_p1 = scmp.lt.u32.totalorder %s129_s17, %s274_s0 }
   0x6   :  { %p135_p2 = pnand %p133_p1, %p130_p0 }
   0x8   :  { %138 = shalt.err (!%p135_p2)
}
   0x9   :  { %s203_s22 = smov [#allocation2]   ;;  %s139_s1 = scalar_lea.vmem %s27_s14, 16 }
   0xa   :  { %19 = dma.hbm_to_smem %s274_s0, 16, %s203_s22, [#allocation5]  }
   0xb   :  { %p140_p3 = scmp.ne.s32.totalorder %s27_s14, %s139_s1  ;;  %p144_p4 = scmp.lt.s32.totalorder %s27_s14, %s27_s14 }
   0xc   :  { %p145_p5 = scmp.lt.s32.totalorder %s139_s1, %s139_s1 }
   0xe   :  { %p146_p6 = por %p145_p5, %p144_p4 }
  0x10   :  { %p147_p7 = pnand %p146_p6, %p140_p3 }
  0x12   :  { %150 = shalt.err (!%p147_p7)
}
  0x13   :  { %s204_s25 = smov [#allocation7]   ;;  %s205_s26 = smov [#allocation8]  }
  0x14   :  { %29 = dma.vmem_to_smem %s27_s14, 16, %s204_s25, [#allocation6]  }
  0x15   :  { %s35_s27 = sshll.u32 %s205_s26, 4  ;;  %s151_s30 = scalar_lea.hbm %s276_s2, 256  ;;  %s36_s27 = int_to_ptr.vmem [resolvable:$true] %s35_s27 }
  0x16   :  { %p152_p8 = scmp.ne.s32.totalorder %s276_s2, %s151_s30  ;;  %p155_p9 = scmp.lt.u32.totalorder %s151_s30, %s276_s2 }
  0x18   :  { %p157_p10 = pnand %p155_p9, %p152_p8 }
  0x1a   :  { %160 = shalt.err (!%p157_p10)
}
  0x1b   :  { %s161_s7 = scalar_lea.vmem %s36_s27, 256  ;;  %p166_p12 = scmp.lt.s32.totalorder %s36_s27, %s36_s27 }
  0x1c   :  { %p162_p11 = scmp.ne.s32.totalorder %s36_s27, %s161_s7  ;;  %p167_p13 = scmp.lt.s32.totalorder %s161_s7, %s161_s7 }
  0x1e   :  { %p168_p0 = por %p167_p13, %p166_p12 }
  0x20   :  { %p169_p1 = pnand %p168_p0, %p162_p11 }
  0x22   :  { %172 = shalt.err (!%p169_p1)
}
  0x23   :  { %s206_s8 = smov 128   ;;  %s207_s9 = smov 8  }
  0x24   :  { %41 = dma.hbm_to_vmem [thread:$0]  %s276_s2, 256, %s36_s27, [#allocation3], %s206_s8, %s206_s8, %s207_s9  }
  0x25   :  { %195 = dma.done.wait [#allocation5], 16  }
  0x26   :  { %196 = vsyncadd [#allocation5], 4294967280 }
  0x27   :  { %197 = dma.done.wait [#allocation6], 16  }
  0x28   :  { %198 = vsyncadd [#allocation6], 4294967280 }
  0x29   :  { %199 = dma.done.wait [#allocation3], 256  }
  0x2a   :  { %200 = vsyncadd [#allocation3], 4294967040 }
  0x2b   :  { %51 = sfence }
  0x2c   :  { %s53_s12 = sld [smem:[#allocation2]]  ;;  %s116_s14 = sld [smem:[#allocation2 + $0x1]]  ;;  %v52_v0 = vld [vmem:[#allocation8] sm:$0xff]  ;;  %v60_v1 = vld [vmem:[#allocation8 + $0x8] sm:$0xff] }
  0x2d   :  { %s56_s13 = sld [smem:[#allocation7]]  ;;  %s117_s15 = sld [smem:[#allocation2 + $0x2]] }
  0x2e   :  { %s118_s16 = sld [smem:[#allocation7 + $0x1]]  ;;  %s119_s17 = sld [smem:[#allocation2 + $0x3]] }
  0x2f   :  { %s120_s18 = sld [smem:[#allocation2 + $0x4]]  ;;  %s121_s19 = sld [smem:[#allocation7 + $0x2]] }
  0x30   :  { %s122_s20 = sld [smem:[#allocation2 + $0x5]]  ;;  %s208_s2 = smov [#allocation9]  }
  0x31   :  { %s102_s21 = sshll.u32 %s208_s2, 4  ;;  %s103_s21 = int_to_ptr.vmem [resolvable:$true] %s102_s21 }
  0x32   :  { %v54_v2 = vstv %s53_s12  ;;  %v62_v5 = vstv %s116_s14  ;;  %s173_s22 = scalar_lea.vmem %s103_s21, 384  ;;  %p178_p3 = scmp.lt.s32.totalorder %s103_s21, %s103_s21 }
  0x33   :  { %v57_v3 = vstv %s56_s13  ;;  %v55_v4 = vmul.f32 %v54_v2, %v52_v0  ;;  %v69_v6 = vstv %s117_s15  ;;  %v63_v7 = vmul.f32 %v62_v5, %v60_v1  ;;  %p174_p2 = scmp.ne.s32.totalorder %s103_s21, %s173_s22  ;;  %p179_p4 = scmp.lt.s32.totalorder %s173_s22, %s173_s22 }
  0x34   :  { %v70_v8 = vmul.f32 %v69_v6, %v52_v0  ;;  %v72_v9 = vstv %s118_s16  ;;  %v76_v10 = vstv %s119_s17 }
  0x35   :  { %v58_v11 = vadd.f32 %v57_v3, %v55_v4  ;;  %v77_v12 = vmul.f32 %v76_v10, %v60_v1  ;;  %v84_v13 = vstv %s120_s18  ;;  %v87_v14 = vstv %s121_s19  ;;  %p180_p5 = por %p179_p4, %p178_p3 }
  0x36   :  { %v73_v15 = vadd.f32 %v72_v9, %v70_v8  ;;  %v85_v16 = vmul.f32 %v84_v13, %v52_v0  ;;  %v91_v17 = vstv %s122_s20 }
  0x37   :  { %v64_v18 = vadd.f32 %v63_v7, %v58_v11  ;;  %v92_v19 = vmul.f32 %v91_v17, %v60_v1  ;;  %p181_p6 = pnand %p180_p5, %p174_p2 }
  0x38   :  { %v78_v20 = vadd.f32 %v77_v12, %v73_v15  ;;  %v88_v21 = vadd.f32 %v87_v14, %v85_v16 }
  0x39   :  { %v65_v22 = vmax.f32 %v64_v18, 0.0 }
  0x3a   :  { %v79_v23 = vmax.f32 %v78_v20, 0.0  ;;  %v93_v24 = vadd.f32 %v92_v19, %v88_v21 }
  0x3b   :  { %66 = vst [vmem:[#allocation9] sm:$0xff] %v65_v22 }
  0x3c   :  { %81 = vst [vmem:[#allocation9 + $0x8] sm:$0xff] %v79_v23  ;;  %v94_v25 = vmax.f32 %v93_v24, 0.0 }
  0x3e   :  { %96 = vst [vmem:[#allocation9 + $0x10] sm:$0xff] %v94_v25 }
  0x3f   :  { %184 = shalt.err (!%p181_p6)
}
  0x40   :  { %s185_s1 = scalar_lea.hbm %s277_s3, 384 }
  0x41   :  { %p186_p7 = scmp.ne.s32.totalorder %s277_s3, %s185_s1  ;;  %p189_p8 = scmp.lt.u32.totalorder %s185_s1, %s277_s3 }
  0x43   :  { %p191_p9 = pnand %p189_p8, %p186_p7 }
  0x45   :  { %194 = shalt.err (!%p191_p9)
}
  0x46   :  { %108 = dma.vmem_to_hbm [thread:$0]  %s103_s21, 384, %s277_s3, [#allocation4], %s206_s8, %s206_s8, %s207_s9  }
  0x47   :  { %201 = dma.done.wait [#allocation4], 384  }
  0x48   :  { %202 = vsyncadd [#allocation4], 4294966912 }
  0x49   :  { %112 = vsyncpa [#allocation3], 1 }
  0x4a   :  { %113 = vsyncpa [#allocation4], 1 }
  0x4b   :  { %114 = vsyncpa [#allocation5], 1 }
  0x4c   :  { %115 = vsyncpa [#allocation6], 1 }

</bundles_post_ra>
